<compile_context>
chip_gen: v5e
topology: v5e:2x2
jax: 0.10.0
libtpu: 0.0.40
codegen_flags: <defaults>
</compile_context>

<pallas_src>
import functools

import jax
import jax.numpy as jnp
from jax import lax
from jax.experimental import pallas as pl
from jax.experimental.pallas import tpu as pltpu

# MobileNetV3-style batch-norm params (conv_blocks._BATCH_NORM_PARAMS).
_BN_EPS = 1e-3


def _conv_bn_relu_kernel(x_ref, w_ref, b_ref, o_ref, *, kh_taps, kw_taps, wp, q):
    """One batch element per grid step.

    x_ref: (Cin, Lin)          padded, row-major flattened input (bf16)
    w_ref: (KH*KW, Cout, Cin)  BN-scale-folded weights, one (Cout,Cin) per tap
    b_ref: (Cout, 1)           folded BN bias (f32)
    o_ref: (Cout, Q)           Q = Ho*Wp flattened output, lane-dense (f32)
    """
    cout, _ = o_ref.shape
    acc = jnp.zeros((cout, q), jnp.float32)

    # Unrolled loop over the (small, static) kernel window.  Each tap is a
    # contiguous lane slice of the flattened input feeding one MXU matmul
    # (Cout, Cin) x (Cin, Q) accumulated in f32 — no reshapes, no strided
    # VMEM copies.
    t = 0
    for kh in range(kh_taps):
        for kw in range(kw_taps):
            start = kh * wp + kw                       # static lane offset
            patch = x_ref[:, start:start + q]          # (Cin, Q) bf16
            acc += jnp.dot(w_ref[t], patch,
                           preferred_element_type=jnp.float32)
            t += 1

    # Fused (pre-folded) batch-norm bias + ReLU epilogue, lane-dense store.
    o_ref[...] = jnp.maximum(acc + b_ref[...], 0.0)


@functools.partial(jax.jit, static_argnames=("padding",))
def conv2d_bn_relu(x_nchw, w_oihw, gamma, beta, running_mean, running_var,
                   padding=1):
    """PyTorch-equivalent forward: Conv2d(bias=False) -> BN(eval) -> ReLU.

    x_nchw: (N, Cin, H, W)   w_oihw: (Cout, Cin, KH, KW)
    returns (N, Cout, H_out, W_out) float32 in NCHW (same as the module).
    """
    N, Cin, H, W = x_nchw.shape
    Cout, _, KH, KW = w_oihw.shape
    p = padding
    Hp, Wp = H + 2 * p, W + 2 * p
    Ho, Wo = Hp - KH + 1, Wp - KW + 1       # stride = 1
    Q = Ho * Wp                             # flat output length (incl. seam cols)
    Lin = (Hp + 1) * Wp                     # +1 zero row keeps last tap slice in bounds

    # Spatial zero-pad in NCHW (no transpose), flatten H,W row-major, cast bf16.
    x_p = jnp.pad(x_nchw, ((0, 0), (0, 0), (p, p + 1), (p, p)))
    x_flat = x_p.reshape(N, Cin, Lin).astype(jnp.bfloat16)

    # Fold BN (inference form): scale into the weights, bias stays separate.
    inv_std = gamma * lax.rsqrt(running_var + _BN_EPS)                 # (Cout,)
    bias = (beta - running_mean * inv_std).reshape(Cout, 1).astype(jnp.float32)
    w_scaled = w_oihw * inv_std[:, None, None, None]
    # (Cout, Cin, KH, KW) -> (KH*KW, Cout, Cin): one tiny matrix per tap.
    w_taps = jnp.transpose(w_scaled, (2, 3, 0, 1)).reshape(KH * KW, Cout, Cin)
    w_taps = w_taps.astype(jnp.bfloat16)

    kernel = functools.partial(_conv_bn_relu_kernel,
                               kh_taps=KH, kw_taps=KW, wp=Wp, q=Q)

    flops = 2 * N * Ho * Wo * KH * KW * Cin * Cout
    bytes_accessed = (x_flat.size * 2 + w_taps.size * 2 + bias.size * 4
                      + N * Cout * Q * 4)

    out_flat = pl.pallas_call(
        kernel,
        out_shape=jax.ShapeDtypeStruct((N, Cout, Q), jnp.float32),
        grid_spec=pltpu.PrefetchScalarGridSpec(
            num_scalar_prefetch=0,
            grid=(N,),
            in_specs=[
                pl.BlockSpec((pl.Squeezed(), Cin, Lin), lambda n: (n, 0, 0)),
                pl.BlockSpec((KH * KW, Cout, Cin), lambda n: (0, 0, 0)),
                pl.BlockSpec((Cout, 1), lambda n: (0, 0)),
            ],
            out_specs=pl.BlockSpec((pl.Squeezed(), Cout, Q),
                                   lambda n: (n, 0, 0)),
        ),
        compiler_params=pltpu.CompilerParams(
            dimension_semantics=("parallel",)),
        cost_estimate=pl.CostEstimate(flops=flops, transcendentals=0,
                                      bytes_accessed=bytes_accessed),
    )(x_flat, w_taps, bias)

    # (N, Cout, Ho*Wp) -> (N, Cout, Ho, Wo): reshape is free; the slice crops
    # the 2*pad seam columns from the flat-conv trick.  Already NCHW.
    return out_flat.reshape(N, Cout, Ho, Wp)[:, :, :, :Wo]


def _reference(x_nchw, w_oihw, gamma, beta, running_mean, running_var,
               padding=1):
    """Pure-JAX f32 reference (lax conv) for correctness check."""
    y = lax.conv_general_dilated(
        x_nchw, w_oihw, window_strides=(1, 1),
        padding=[(padding, padding), (padding, padding)],
        dimension_numbers=("NCHW", "OIHW", "NCHW"))
    scale = (gamma / jnp.sqrt(running_var + _BN_EPS)).reshape(1, -1, 1, 1)
    bias = (beta - running_mean * gamma /
            jnp.sqrt(running_var + _BN_EPS)).reshape(1, -1, 1, 1)
    return jnp.maximum(y * scale + bias, 0.0)


if __name__ == "__main__":
    # Module config: in_channels=4, out_channels=8, kernel_size=3, stride=1,
    # padding=1, groups=1, bias=False, batch_norm=True, activation=ReLU.
    N, Cin, H, W = 2, 4, 16, 16
    Cout, K = 8, 3

    key = jax.random.PRNGKey(0)
    kx, kw, kg, kb, km, kv = jax.random.split(key, 6)
    x = jax.random.normal(kx, (N, Cin, H, W), jnp.float32)
    weight = jax.random.normal(kw, (Cout, Cin, K, K), jnp.float32) * 0.1
    gamma = 1.0 + 0.1 * jax.random.normal(kg, (Cout,), jnp.float32)
    beta = 0.1 * jax.random.normal(kb, (Cout,), jnp.float32)
    running_mean = 0.1 * jax.random.normal(km, (Cout,), jnp.float32)
    running_var = jnp.abs(jax.random.normal(kv, (Cout,), jnp.float32)) + 0.5

    out = conv2d_bn_relu(x, weight, gamma, beta, running_mean, running_var,
                         padding=1)
    out = jax.block_until_ready(out)

    ref = _reference(x, weight, gamma, beta, running_mean, running_var,
                     padding=1)
    assert out.shape == (N, Cout, H, W), out.shape
    # bf16 inputs / f32 accumulation: loosened tolerance vs. the f32 reference.
    max_err = float(jnp.max(jnp.abs(out - ref)))
    assert jnp.allclose(out, ref, atol=5e-2, rtol=5e-2), max_err
    print("KERNEL_OK")
</pallas_src>

<mosaic_0001>
module attributes {stable_mosaic.version = 11 : i64} {
  func.func @_conv_bn_relu_kernel(%arg0: i32, %arg1: memref<1x4x342xbf16, #tpu.memory_space<vmem>>, %arg2: memref<9x8x4xbf16, #tpu.memory_space<vmem>>, %arg3: memref<8x1xf32, #tpu.memory_space<vmem>>, %arg4: memref<1x8x288xf32, #tpu.memory_space<vmem>>) attributes {dimension_semantics = [#tpu.dimension_semantics<parallel>], iteration_bounds = array<i64: 2>, scalar_prefetch = 0 : i64, scratch_operands = 0 : i64, tpu.core_type = #tpu.core_type<tc>, window_params = [{transform_indices = @transform_0, window_bounds = array<i64: 1, 4, 342>}, {pipeline_mode = #tpu.pipeline_mode<synchronous>, transform_indices = @transform_1, window_bounds = array<i64: 9, 8, 4>}, {pipeline_mode = #tpu.pipeline_mode<synchronous>, transform_indices = @transform_2, window_bounds = array<i64: 8, 1>}, {transform_indices = @transform_3, window_bounds = array<i64: 1, 8, 288>}]} {
    %cst = arith.constant 0.000000e+00 : f32
    %0 = vector.broadcast %cst : f32 to vector<8x288xf32>
    %c0 = arith.constant 0 : index
    %c0_0 = arith.constant 0 : index
    %c0_1 = arith.constant 0 : index
    %1 = vector.load %arg1[%c0, %c0_0, %c0_1] : memref<1x4x342xbf16, #tpu.memory_space<vmem>>, vector<1x4x288xbf16>
    %2 = vector.shape_cast %1 : vector<1x4x288xbf16> to vector<4x288xbf16>
    %c0_2 = arith.constant 0 : index
    %c0_3 = arith.constant 0 : index
    %c0_4 = arith.constant 0 : index
    %3 = vector.load %arg2[%c0_2, %c0_3, %c0_4] : memref<9x8x4xbf16, #tpu.memory_space<vmem>>, vector<1x8x4xbf16>
    %4 = vector.shape_cast %3 : vector<1x8x4xbf16> to vector<8x4xbf16>
    %cst_5 = arith.constant dense<0.000000e+00> : vector<8x288xf32>
    %5 = tpu.matmul %4, %2, %cst_5 {dimension_numbers = #tpu.dot_dimension_numbers<[1], [0], [0], [1], [0, 0, 1, 1], [], []>} : vector<8x4xbf16>, vector<4x288xbf16>, vector<8x288xf32> -> vector<8x288xf32>
    %6 = arith.addf %0, %5 : vector<8x288xf32>
    %c0_6 = arith.constant 0 : index
    %c0_7 = arith.constant 0 : index
    %c1 = arith.constant 1 : index
    %7 = vector.load %arg1[%c0_6, %c0_7, %c1] : memref<1x4x342xbf16, #tpu.memory_space<vmem>>, vector<1x4x288xbf16>
    %8 = vector.shape_cast %7 : vector<1x4x288xbf16> to vector<4x288xbf16>
    %c1_8 = arith.constant 1 : index
    %c0_9 = arith.constant 0 : index
    %c0_10 = arith.constant 0 : index
    %9 = vector.load %arg2[%c1_8, %c0_9, %c0_10] : memref<9x8x4xbf16, #tpu.memory_space<vmem>>, vector<1x8x4xbf16>
    %10 = vector.shape_cast %9 : vector<1x8x4xbf16> to vector<8x4xbf16>
    %cst_11 = arith.constant dense<0.000000e+00> : vector<8x288xf32>
    %11 = tpu.matmul %10, %8, %cst_11 {dimension_numbers = #tpu.dot_dimension_numbers<[1], [0], [0], [1], [0, 0, 1, 1], [], []>} : vector<8x4xbf16>, vector<4x288xbf16>, vector<8x288xf32> -> vector<8x288xf32>
    %12 = arith.addf %6, %11 : vector<8x288xf32>
    %c0_12 = arith.constant 0 : index
    %c0_13 = arith.constant 0 : index
    %c2 = arith.constant 2 : index
    %13 = vector.load %arg1[%c0_12, %c0_13, %c2] : memref<1x4x342xbf16, #tpu.memory_space<vmem>>, vector<1x4x288xbf16>
    %14 = vector.shape_cast %13 : vector<1x4x288xbf16> to vector<4x288xbf16>
    %c2_14 = arith.constant 2 : index
    %c0_15 = arith.constant 0 : index
    %c0_16 = arith.constant 0 : index
    %15 = vector.load %arg2[%c2_14, %c0_15, %c0_16] : memref<9x8x4xbf16, #tpu.memory_space<vmem>>, vector<1x8x4xbf16>
    %16 = vector.shape_cast %15 : vector<1x8x4xbf16> to vector<8x4xbf16>
    %cst_17 = arith.constant dense<0.000000e+00> : vector<8x288xf32>
    %17 = tpu.matmul %16, %14, %cst_17 {dimension_numbers = #tpu.dot_dimension_numbers<[1], [0], [0], [1], [0, 0, 1, 1], [], []>} : vector<8x4xbf16>, vector<4x288xbf16>, vector<8x288xf32> -> vector<8x288xf32>
    %18 = arith.addf %12, %17 : vector<8x288xf32>
    %c0_18 = arith.constant 0 : index
    %c0_19 = arith.constant 0 : index
    %c18 = arith.constant 18 : index
    %19 = vector.load %arg1[%c0_18, %c0_19, %c18] : memref<1x4x342xbf16, #tpu.memory_space<vmem>>, vector<1x4x288xbf16>
    %20 = vector.shape_cast %19 : vector<1x4x288xbf16> to vector<4x288xbf16>
    %c3 = arith.constant 3 : index
    %c0_20 = arith.constant 0 : index
    %c0_21 = arith.constant 0 : index
    %21 = vector.load %arg2[%c3, %c0_20, %c0_21] : memref<9x8x4xbf16, #tpu.memory_space<vmem>>, vector<1x8x4xbf16>
    %22 = vector.shape_cast %21 : vector<1x8x4xbf16> to vector<8x4xbf16>
    %cst_22 = arith.constant dense<0.000000e+00> : vector<8x288xf32>
    %23 = tpu.matmul %22, %20, %cst_22 {dimension_numbers = #tpu.dot_dimension_numbers<[1], [0], [0], [1], [0, 0, 1, 1], [], []>} : vector<8x4xbf16>, vector<4x288xbf16>, vector<8x288xf32> -> vector<8x288xf32>
    %24 = arith.addf %18, %23 : vector<8x288xf32>
    %c0_23 = arith.constant 0 : index
    %c0_24 = arith.constant 0 : index
    %c19 = arith.constant 19 : index
    %25 = vector.load %arg1[%c0_23, %c0_24, %c19] : memref<1x4x342xbf16, #tpu.memory_space<vmem>>, vector<1x4x288xbf16>
    %26 = vector.shape_cast %25 : vector<1x4x288xbf16> to vector<4x288xbf16>
    %c4 = arith.constant 4 : index
    %c0_25 = arith.constant 0 : index
    %c0_26 = arith.constant 0 : index
    %27 = vector.load %arg2[%c4, %c0_25, %c0_26] : memref<9x8x4xbf16, #tpu.memory_space<vmem>>, vector<1x8x4xbf16>
    %28 = vector.shape_cast %27 : vector<1x8x4xbf16> to vector<8x4xbf16>
    %cst_27 = arith.constant dense<0.000000e+00> : vector<8x288xf32>
    %29 = tpu.matmul %28, %26, %cst_27 {dimension_numbers = #tpu.dot_dimension_numbers<[1], [0], [0], [1], [0, 0, 1, 1], [], []>} : vector<8x4xbf16>, vector<4x288xbf16>, vector<8x288xf32> -> vector<8x288xf32>
    %30 = arith.addf %24, %29 : vector<8x288xf32>
    %c0_28 = arith.constant 0 : index
    %c0_29 = arith.constant 0 : index
    %c20 = arith.constant 20 : index
    %31 = vector.load %arg1[%c0_28, %c0_29, %c20] : memref<1x4x342xbf16, #tpu.memory_space<vmem>>, vector<1x4x288xbf16>
    %32 = vector.shape_cast %31 : vector<1x4x288xbf16> to vector<4x288xbf16>
    %c5 = arith.constant 5 : index
    %c0_30 = arith.constant 0 : index
    %c0_31 = arith.constant 0 : index
    %33 = vector.load %arg2[%c5, %c0_30, %c0_31] : memref<9x8x4xbf16, #tpu.memory_space<vmem>>, vector<1x8x4xbf16>
    %34 = vector.shape_cast %33 : vector<1x8x4xbf16> to vector<8x4xbf16>
    %cst_32 = arith.constant dense<0.000000e+00> : vector<8x288xf32>
    %35 = tpu.matmul %34, %32, %cst_32 {dimension_numbers = #tpu.dot_dimension_numbers<[1], [0], [0], [1], [0, 0, 1, 1], [], []>} : vector<8x4xbf16>, vector<4x288xbf16>, vector<8x288xf32> -> vector<8x288xf32>
    %36 = arith.addf %30, %35 : vector<8x288xf32>
    %c0_33 = arith.constant 0 : index
    %c0_34 = arith.constant 0 : index
    %c36 = arith.constant 36 : index
    %37 = vector.load %arg1[%c0_33, %c0_34, %c36] : memref<1x4x342xbf16, #tpu.memory_space<vmem>>, vector<1x4x288xbf16>
    %38 = vector.shape_cast %37 : vector<1x4x288xbf16> to vector<4x288xbf16>
    %c6 = arith.constant 6 : index
    %c0_35 = arith.constant 0 : index
    %c0_36 = arith.constant 0 : index
    %39 = vector.load %arg2[%c6, %c0_35, %c0_36] : memref<9x8x4xbf16, #tpu.memory_space<vmem>>, vector<1x8x4xbf16>
    %40 = vector.shape_cast %39 : vector<1x8x4xbf16> to vector<8x4xbf16>
    %cst_37 = arith.constant dense<0.000000e+00> : vector<8x288xf32>
    %41 = tpu.matmul %40, %38, %cst_37 {dimension_numbers = #tpu.dot_dimension_numbers<[1], [0], [0], [1], [0, 0, 1, 1], [], []>} : vector<8x4xbf16>, vector<4x288xbf16>, vector<8x288xf32> -> vector<8x288xf32>
    %42 = arith.addf %36, %41 : vector<8x288xf32>
    %c0_38 = arith.constant 0 : index
    %c0_39 = arith.constant 0 : index
    %c37 = arith.constant 37 : index
    %43 = vector.load %arg1[%c0_38, %c0_39, %c37] : memref<1x4x342xbf16, #tpu.memory_space<vmem>>, vector<1x4x288xbf16>
    %44 = vector.shape_cast %43 : vector<1x4x288xbf16> to vector<4x288xbf16>
    %c7 = arith.constant 7 : index
    %c0_40 = arith.constant 0 : index
    %c0_41 = arith.constant 0 : index
    %45 = vector.load %arg2[%c7, %c0_40, %c0_41] : memref<9x8x4xbf16, #tpu.memory_space<vmem>>, vector<1x8x4xbf16>
    %46 = vector.shape_cast %45 : vector<1x8x4xbf16> to vector<8x4xbf16>
    %cst_42 = arith.constant dense<0.000000e+00> : vector<8x288xf32>
    %47 = tpu.matmul %46, %44, %cst_42 {dimension_numbers = #tpu.dot_dimension_numbers<[1], [0], [0], [1], [0, 0, 1, 1], [], []>} : vector<8x4xbf16>, vector<4x288xbf16>, vector<8x288xf32> -> vector<8x288xf32>
    %48 = arith.addf %42, %47 : vector<8x288xf32>
    %c0_43 = arith.constant 0 : index
    %c0_44 = arith.constant 0 : index
    %c38 = arith.constant 38 : index
    %49 = vector.load %arg1[%c0_43, %c0_44, %c38] : memref<1x4x342xbf16, #tpu.memory_space<vmem>>, vector<1x4x288xbf16>
    %50 = vector.shape_cast %49 : vector<1x4x288xbf16> to vector<4x288xbf16>
    %c8 = arith.constant 8 : index
    %c0_45 = arith.constant 0 : index
    %c0_46 = arith.constant 0 : index
    %51 = vector.load %arg2[%c8, %c0_45, %c0_46] : memref<9x8x4xbf16, #tpu.memory_space<vmem>>, vector<1x8x4xbf16>
    %52 = vector.shape_cast %51 : vector<1x8x4xbf16> to vector<8x4xbf16>
    %cst_47 = arith.constant dense<0.000000e+00> : vector<8x288xf32>
    %53 = tpu.matmul %52, %50, %cst_47 {dimension_numbers = #tpu.dot_dimension_numbers<[1], [0], [0], [1], [0, 0, 1, 1], [], []>} : vector<8x4xbf16>, vector<4x288xbf16>, vector<8x288xf32> -> vector<8x288xf32>
    %54 = arith.addf %48, %53 : vector<8x288xf32>
    %c0_48 = arith.constant 0 : index
    %c0_49 = arith.constant 0 : index
    %55 = vector.load %arg3[%c0_48, %c0_49] : memref<8x1xf32, #tpu.memory_space<vmem>>, vector<8x1xf32>
    %56 = vector.broadcast %55 : vector<8x1xf32> to vector<8x288xf32>
    %57 = arith.addf %54, %56 : vector<8x288xf32>
    %cst_50 = arith.constant 0.000000e+00 : f32
    %58 = vector.broadcast %cst_50 : f32 to vector<8x288xf32>
    %59 = arith.maximumf %57, %58 : vector<8x288xf32>
    %c0_51 = arith.constant 0 : index
    %c0_52 = arith.constant 0 : index
    %c0_53 = arith.constant 0 : index
    %60 = vector.load %arg4[%c0_51, %c0_52, %c0_53] : memref<1x8x288xf32, #tpu.memory_space<vmem>>, vector<1x8x288xf32>
    %61 = vector.shape_cast %60 : vector<1x8x288xf32> to vector<8x288xf32>
    %62 = vector.shape_cast %59 : vector<8x288xf32> to vector<1x8x288xf32>
    tpu.vector_store %arg4[%c0_51, %c0_52, %c0_53], %62 {strides = array<i32>} : memref<1x8x288xf32, #tpu.memory_space<vmem>>, vector<1x8x288xf32>,
    return
  }
  func.func @transform_0(%arg0: i32) -> (i32, i32, i32) {
    %c0_i32 = arith.constant 0 : i32
    %c0_i32_0 = arith.constant 0 : i32
    %c0_i32_1 = arith.constant 0 : i32
    return %arg0, %c0_i32, %c0_i32_0 : i32, i32, i32
  }
  func.func @transform_1(%arg0: i32) -> (i32, i32, i32) {
    %c0_i32 = arith.constant 0 : i32
    %c0_i32_0 = arith.constant 0 : i32
    %c0_i32_1 = arith.constant 0 : i32
    %c0_i32_2 = arith.constant 0 : i32
    return %c0_i32, %c0_i32_0, %c0_i32_1 : i32, i32, i32
  }
  func.func @transform_2(%arg0: i32) -> (i32, i32) {
    %c0_i32 = arith.constant 0 : i32
    %c0_i32_0 = arith.constant 0 : i32
    %c0_i32_1 = arith.constant 0 : i32
    return %c0_i32, %c0_i32_0 : i32, i32
  }
  func.func @transform_3(%arg0: i32) -> (i32, i32, i32) {
    %c0_i32 = arith.constant 0 : i32
    %c0_i32_0 = arith.constant 0 : i32
    %c0_i32_1 = arith.constant 0 : i32
    return %arg0, %c0_i32, %c0_i32_0 : i32, i32, i32
  }
}

</mosaic_0001>

<bundles_post_ra>
// kernel: conv2d_bn_relu.1
= control target key start
LH: loop header
LB: loop body
LE: loop exit
PB: predicated region body
PF: predicated region fallthrough
CT: control target
= control target key end

     0   :  { %s988_s12 = smov 0   ;;  %s1116_s0 = inlined_call_operand.vmem [shape: bf16[2,4,342], index: 0, kind: input, shape index: {}]   ;;  %s1117_s1 = inlined_call_operand.vmem [shape: bf16[9,8,4], index: 1, kind: input, shape index: {}]   ;;  %s1118_s2 = inlined_call_operand.vmem [shape: f32[8,1], index: 2, kind: input, shape index: {}]   ;;  %s1119_s3 = inlined_call_operand.vmem [shape: f32[2,8,288], index: 3, kind: output, shape index: {}]  }
   0x1 LB: > { %s887_s13 = sadd.s32 4294967295, %s957_s12   ;;  %p891_p0 = scmp.ge.s32.totalorder %s957_s12, 1  ;;  %s957_s12 = sphi %s988_s12, %s13_s12  }
   0x2   : > { %p137_p1 = scmp.lt.s32.totalorder %s957_s12, 3 }
   0x4   : > { %p138_p2 = pnand %p891_p0, %p137_p1 }
   0x5   : > { %p161_p3 = scmp.lt.s32.totalorder (!%p138_p2), %s887_s13, 1  ;;  %s959_s18 = smov (!%p138_p2), 127  }
   0x6   : > { %141 = sbr.rel (%p138_p2) target bundleno = 382 (0x17e), region = 32  ;;  %s960_s19 = smov (!%p138_p2), 126  }
   0x7   : > { %s961_s20 = smov (!%p138_p2), 110   ;;  %s962_s21 = smov (!%p138_p2), 109  }
   0x8   : > { %s963_s22 = smov (!%p138_p2), 108   ;;  %s964_s23 = smov (!%p138_p2), 92  }
   0x9   : > { %s965_s24 = smov (!%p138_p2), 91   ;;  %s966_s25 = smov (!%p138_p2), 90  }
   0xb   : > { %s1121_s13 = smov (!%p161_p3, %s887_s13), 1  ;;  %vm197_vm0 = vcmask 1041408   ;;  %v173_v36 = vld [vmem:[%s1117_s1] sm:$0xf]  ;;  %vm193_vm1 = vcmask 31744   ;;  %vm190_vm2 = vcmask 1039360  }
   0xc   : > { %s931_s14 = smul.u32 6, %s1121_s13  ;;  %v894_v44 = vld [vmem:[%s1117_s1 + $0x4] sm:$0xf]  ;;  %vm315_vm3 = vcmask 1031168   ;;  %v901_v48 = vld [vmem:[%s1117_s1 + $0x8] sm:$0xf] }
   0xd   : > { %vm389_vm4 = vcmask 900096   ;;  %vm463_vm5 = vcmask 891904   ;;  %vm537_vm6 = vcmask 883712   ;;  %vm611_vm7 = vcmask 752640  }
   0xe   : > { %s1002_s17 = scalar_lea.vmem %s1116_s0, %s931_s14  ;;  %vm685_vm8 = vcmask 744448   ;;  %vm759_vm9 = vcmask 736256   ;;  %vm830_vm10 = vcmask 261120  }
   0xf   : > { %v172_v0 = vld [vmem:[%s1002_s17] sm:$0x3f] }
  0x10   : > { %177 = vst [vmem:[#allocation1] ss:$4 sm:$0xff] %v172_v0  ;;  %v298_v4 = vld [vmem:[%s1002_s17] sm:$0x3f] }
  0x11   : > { %v372_v8 = vld [vmem:[%s1002_s17] sm:$0x3f] }
  0x12   : > { %v446_v12 = vld [vmem:[%s1002_s17] sm:$0x3f] }
  0x13   : > { %v520_v16 = vld [vmem:[%s1002_s17] sm:$0x3f] }
  0x14   : > { %v594_v20 = vld [vmem:[%s1002_s17] sm:$0x3f] }
  0x15   : > { %v668_v24 = vld [vmem:[%s1002_s17] sm:$0x3f] }
  0x16   : > { %v742_v28 = vld [vmem:[%s1002_s17] sm:$0x3f] }
  0x17   : > { %v182_v1 = vld.sshfl [vmem:[#allocation1 + $0x10] sm:$0xff pattern:$0x73625140]  ;;  %v180_v2 = vld.sshfl [vmem:[#allocation1 + $0x8] sm:$0xff pattern:$0x73625140] }
  0x18   : > { %188 = vrot.lane.b32.xlu0 %v182_v1, %s959_s18  ;;  %186 = vrot.lane.b32.xlu1 %v180_v2, %s959_s18  ;;  %v178_v3 = vld.sshfl [vmem:[#allocation1] sm:$0xff pattern:$0x73625140]  ;;  %v905_v1 = vld [vmem:[%s1117_s1 + $0xc] sm:$0xf] }
  0x19   : > { %246 = vst [vmem:[#allocation1] ss:$4 sm:$0xff] %v172_v0 }
  0x20   : > { %184 = vrot.lane.b32.xlu0 %v178_v3, %s959_s18  ;;  %v1006_v5 = vld.sshfl [vmem:[#allocation1] sm:$0xff pattern:$0x73625140]  ;;  %v1008_v6 = vld.sshfl [vmem:[#allocation1 + $0x8] sm:$0xff pattern:$0x73625140] }
  0x21   : > { %v1010_v7 = vld.sshfl [vmem:[#allocation1 + $0x10] sm:$0xff pattern:$0x73625140]  ;;  %v253_v35 = vsel %vm197_vm0, %v1006_v5, 0  ;;  %v255_v51 = vsel %vm197_vm0, %v1008_v6, 0 }
  0x22   : > { %302 = vst [vmem:[#allocation1] ss:$4 sm:$0xff] %v298_v4  ;;  %266 = vmatpush.bf16.msra.mxu3 %v253_v35  ;;  %v257_v42 = vsel %vm197_vm0, %v1010_v7, 0 }
  0x25   : > { %898 = vmatmul.msk.bf16.vlgmr.msra.gmra.mxu3 %vm193_vm1, %v173_v36 }
  0x29   : > { %v303_v9 = vld.sshfl [vmem:[#allocation1] sm:$0xff pattern:$0x73625140]  ;;  %v305_v10 = vld.sshfl [vmem:[#allocation1 + $0x8] sm:$0xff pattern:$0x73625140] }
  0x2a   : > { %309 = vrot.lane.b32.xlu1 %v303_v9, %s960_s19  ;;  %311 = vrot.lane.b32.xlu2 %v305_v10, %s960_s19  ;;  %v307_v11 = vld.sshfl [vmem:[#allocation1 + $0x10] sm:$0xff pattern:$0x73625140] }
  0x2b   : > { %376 = vst [vmem:[#allocation1] ss:$4 sm:$0xff] %v372_v8 }
  0x32   : > { %v381_v13 = vld.sshfl [vmem:[#allocation1 + $0x10] sm:$0xff pattern:$0x73625140]  ;;  %v377_v14 = vld.sshfl [vmem:[#allocation1] sm:$0xff pattern:$0x73625140]  ;;  %313 = vrot.lane.b32.xlu2 %v307_v11, %s960_s19 }
  0x33   : > { %387 = vrot.lane.b32.xlu1 %v381_v13, %s961_s20  ;;  %v379_v15 = vld.sshfl [vmem:[#allocation1 + $0x8] sm:$0xff pattern:$0x73625140] }
  0x34   : > { %385 = vrot.lane.b32.xlu0 %v379_v15, %s961_s20  ;;  %450 = vst [vmem:[#allocation1] ss:$4 sm:$0xff] %v446_v12  ;;  %v913_v15 = vld [vmem:[%s1117_s1 + $0x14] sm:$0xf] }
  0x3a   : > { %383 = vrot.lane.b32.xlu2 %v377_v14, %s961_s20 }
  0x3b   : > { %v455_v17 = vld.sshfl [vmem:[#allocation1 + $0x10] sm:$0xff pattern:$0x73625140]  ;;  %v453_v18 = vld.sshfl [vmem:[#allocation1 + $0x8] sm:$0xff pattern:$0x73625140] }
  0x3c   : > { %461 = vrot.lane.b32.xlu0 %v455_v17, %s962_s21  ;;  %v451_v19 = vld.sshfl [vmem:[#allocation1] sm:$0xff pattern:$0x73625140] }
  0x3d   : > { %457 = vrot.lane.b32.xlu1 %v451_v19, %s962_s21  ;;  %524 = vst [vmem:[#allocation1] ss:$4 sm:$0xff] %v520_v16  ;;  %v909_v16 = vld [vmem:[%s1117_s1 + $0x10] sm:$0xf] }
  0x42   : > { %459 = vrot.lane.b32.xlu2 %v453_v18, %s962_s21  ;;  %s932_s21 = smul.u32 24, %s1121_s13 }
  0x44   : > { %v527_v21 = vld.sshfl [vmem:[#allocation1 + $0x8] sm:$0xff pattern:$0x73625140]  ;;  %v525_v22 = vld.sshfl [vmem:[#allocation1] sm:$0xff pattern:$0x73625140] }
  0x45   : > { %533 = vrot.lane.b32.xlu1 %v527_v21, %s963_s22  ;;  %531 = vrot.lane.b32.xlu0 %v525_v22, %s963_s22  ;;  %v529_v23 = vld.sshfl [vmem:[#allocation1 + $0x10] sm:$0xff pattern:$0x73625140] }
  0x46   : > { %598 = vst [vmem:[#allocation1] ss:$4 sm:$0xff] %v594_v20 }
  0x4d   : > { %535 = vrot.lane.b32.xlu1 %v529_v23, %s963_s22  ;;  %v603_v25 = vld.sshfl [vmem:[#allocation1 + $0x10] sm:$0xff pattern:$0x73625140]  ;;  %v601_v26 = vld.sshfl [vmem:[#allocation1 + $0x8] sm:$0xff pattern:$0x73625140] }
  0x4e   : > { %607 = vrot.lane.b32.xlu0 %v601_v26, %s964_s23  ;;  %v599_v27 = vld.sshfl [vmem:[#allocation1] sm:$0xff pattern:$0x73625140] }
  0x4f   : > { %605 = vrot.lane.b32.xlu2 %v599_v27, %s964_s23  ;;  %672 = vst [vmem:[#allocation1] ss:$4 sm:$0xff] %v668_v24 }
  0x56   : > { %v673_v29 = vld.sshfl [vmem:[#allocation1] sm:$0xff pattern:$0x73625140]  ;;  %v677_v30 = vld.sshfl [vmem:[#allocation1 + $0x10] sm:$0xff pattern:$0x73625140] }
  0x57   : > { %683 = vrot.lane.b32.xlu1 %v677_v30, %s965_s24  ;;  %v675_v31 = vld.sshfl [vmem:[#allocation1 + $0x8] sm:$0xff pattern:$0x73625140]  ;;  %609 = vrot.lane.b32.xlu2 %v603_v25, %s964_s23 }
  0x58   : > { %681 = vrot.lane.b32.xlu0 %v675_v31, %s965_s24  ;;  %746 = vst [vmem:[#allocation1] ss:$4 sm:$0xff] %v742_v28 }
  0x5f   : > { %v751_v32 = vld.sshfl [vmem:[#allocation1 + $0x10] sm:$0xff pattern:$0x73625140]  ;;  %v747_v33 = vld.sshfl [vmem:[#allocation1] sm:$0xff pattern:$0x73625140]  ;;  %679 = vrot.lane.b32.xlu2 %v673_v29, %s965_s24  ;;  %s170_s24 = scalar_lea.vmem %s1119_s3, %s932_s21 }
  0x60   : > { %757 = vrot.lane.b32.xlu0 %v751_v32, %s966_s25  ;;  %753 = vrot.lane.b32.xlu1 %v747_v33, %s966_s25  ;;  %v749_v34 = vld.sshfl [vmem:[#allocation1 + $0x8] sm:$0xff pattern:$0x73625140] }
  0x67   : > { %755 = vrot.lane.b32.xlu2 %v749_v34, %s966_s25  ;;  %v917_v34 = vld [vmem:[%s1117_s1 + $0x18] sm:$0xf] }
  0x84   : > { %v312_v37 = vpop.permute.xlu2 %311 }
  0x8a   : > { %v189_v38 = vpop.permute.xlu0 %188  ;;  %v187_v39 = vpop.permute.xlu1 %186 }
  0x8b   : > { %v192_v40 = vsel %vm190_vm2, %v187_v39, %v189_v38  ;;  %v205_v41 = vsel %vm197_vm0, %v189_v38, 0 }
  0x8c   : > { %v202_v43 = vsel %vm197_vm0, %v192_v40, 0  ;;  %240 = vmatpush.bf16.msra.mxu2 %v205_v41  ;;  %v314_v45 = vpop.permute.xlu2 %313 }
  0x8d   : > { %227 = vmatpush.bf16.msra.mxu1 %v202_v43  ;;  %v317_v46 = vsel %vm315_vm3, %v312_v37, %v314_v45  ;;  %v328_v53 = vsel %vm197_vm0, %v314_v45, 0  ;;  %v816_v45 = vld [vmem:[%s1118_s2] sm:$0xff] }
  0x8e   : > { %v325_v47 = vsel %vm197_vm0, %v317_v46, 0  ;;  %v967_v46 = vmov 0  }
  0x8f   : > { %897 = vmatmul.msk.bf16.vlgmr.msra.gmra.mxu2 %vm193_vm1, %v894_v44  ;;  %350 = vmatpush.bf16.msrb.mxu3 %v325_v47  ;;  %v921_v47 = vld [vmem:[%s1117_s1 + $0x1c] sm:$0xf] }
  0x90   : > { %896 = vmatmul.msk.bf16.vlgmr.msra.gmra.mxu1 %vm193_vm1, %v894_v44  ;;  %950 = vset.pattern.permute.xlu0 %v967_v46 }
  0x91   : > { %292 = vmatpush.bf16.msrb.mxu1 %v257_v42  ;;  %819 = vperm.xlu0 %950, %v816_v45  }
  0x92   : > { %v185_v49 = vpop.permute.xlu0 %184  ;;  %903 = vmatmul.msk.bf16.vlgmr.msrb.gmra.mxu3 %vm193_vm1, %v901_v48 }
  0x93   : > { %v191_v50 = vsel %vm190_vm2, %v185_v49, %v187_v39 }
  0x94   : > { %v199_v52 = vsel %vm197_vm0, %v191_v50, 0  ;;  %v384_v57 = vpop.permute.xlu2 %383 }
  0x95   : > { %214 = vmatpush.bf16.msra.mxu0 %v199_v52 }
  0x98   : > { %895 = vmatmul.msk.bf16.vlgmr.msra.gmra.mxu0 %vm193_vm1, %v894_v44 }
  0x99   : > { %279 = vmatpush.bf16.msrb.mxu0 %v255_v51 }
  0x9c   : > { %v310_v54 = vpop.permute.xlu1 %309  ;;  %v460_v2 = vpop.permute.xlu2 %459 }
  0x9d   : > { %363 = vmatpush.bf16.msra.mxu0 %v328_v53  ;;  %v316_v55 = vsel %vm315_vm3, %v310_v54, %v312_v37 }
  0x9e   : > { %v322_v56 = vsel %vm197_vm0, %v316_v55, 0 }
  0x9f   : > { %337 = vmatpush.bf16.msrb.mxu2 %v322_v56 }
  0xa0   : > { %900 = vmatmul.msk.bf16.vlgmr.msrb.gmra.mxu1 %vm193_vm1, %v173_v36 }
  0xa2   : > { %902 = vmatmul.msk.bf16.vlgmr.msrb.gmra.mxu2 %vm193_vm1, %v901_v48 }
  0xa5   : > { %v388_v58 = vpop.permute.xlu1 %387 }
  0xa6   : > { %v402_v59 = vsel %vm197_vm0, %v388_v58, 0  ;;  %v386_v60 = vpop.permute.xlu0 %385 }
  0xa7   : > { %v391_v61 = vsel %vm389_vm4, %v386_v60, %v388_v58  ;;  %v390_v62 = vsel %vm389_vm4, %v384_v57, %v386_v60  ;;  %437 = vmatpush.bf16.msra.mxu3 %v402_v59 }
  0xa8   : > { %899 = vmatmul.msk.bf16.vlgmr.msrb.gmra.mxu0 %vm193_vm1, %v173_v36  ;;  %v399_v63 = vsel %vm197_vm0, %v391_v61, 0  ;;  %v396_v0 = vsel %vm197_vm0, %v390_v62, 0  ;;  %v268_v49 = vpop.f32.mrf.mxu3 }
  0xa9   : > { %411 = vmatpush.bf16.msra.mxu1 %v396_v0  ;;  %424 = vmatpush.bf16.msra.mxu2 %v399_v63  ;;  %v606_v10 = vpop.permute.xlu2 %605 }
  0xaa   : > { %908 = vmatmul.msk.bf16.vlgmr.msra.gmra.mxu3 %vm193_vm1, %v905_v1 }
  0xae   : > { %v462_v3 = vpop.permute.xlu0 %461 }
  0xaf   : > { %v476_v4 = vsel %vm197_vm0, %v462_v3, 0  ;;  %v458_v5 = vpop.permute.xlu1 %457  ;;  %v465_v6 = vsel %vm463_vm5, %v460_v2, %v462_v3 }
  0xb0   : > { %906 = vmatmul.msk.bf16.vlgmr.msra.gmra.mxu1 %vm193_vm1, %v905_v1  ;;  %v464_v7 = vsel %vm463_vm5, %v458_v5, %v460_v2  ;;  %v473_v8 = vsel %vm197_vm0, %v465_v6, 0  ;;  %511 = vmatpush.bf16.msrb.mxu2 %v476_v4  ;;  %v270_v50 = vpop.f32.mrf.mxu3 }
  0xb1   : > { %v470_v9 = vsel %vm197_vm0, %v464_v7, 0  ;;  %498 = vmatpush.bf16.msrb.mxu1 %v473_v8  ;;  %v610_v17 = vpop.permute.xlu2 %609 }
  0xb2   : > { %907 = vmatmul.msk.bf16.vlgmr.msra.gmra.mxu2 %vm193_vm1, %v905_v1  ;;  %485 = vmatpush.bf16.msrb.mxu0 %v470_v9  ;;  %v624_v27 = vsel %vm197_vm0, %v610_v17, 0 }
  0xb7   : > { %v534_v11 = vpop.permute.xlu1 %533  ;;  %v532_v12 = vpop.permute.xlu0 %531 }
  0xb8   : > { %904 = vmatmul.msk.bf16.vlgmr.msra.gmra.mxu0 %vm193_vm1, %v901_v48  ;;  %v538_v13 = vsel %vm537_vm6, %v532_v12, %v534_v11  ;;  %v925_v48 = vld [vmem:[%s1117_s1 + $0x20] sm:$0xf] }
  0xb9   : > { %v544_v14 = vsel %vm197_vm0, %v538_v13, 0  ;;  %v680_v28 = vpop.permute.xlu2 %679 }
  0xba   : > { %559 = vmatpush.bf16.msrb.mxu3 %v544_v14 }
  0xbd   : > { %914 = vmatmul.msk.bf16.vlgmr.msrb.gmra.mxu3 %vm193_vm1, %v913_v15 }
  0xbf   : > { %v536_v18 = vpop.permute.xlu1 %535 }
  0xc0   : > { %911 = vmatmul.msk.bf16.vlgmr.msrb.gmra.mxu1 %vm193_vm1, %v909_v16  ;;  %v539_v19 = vsel %vm537_vm6, %v534_v11, %v536_v18  ;;  %v550_v20 = vsel %vm197_vm0, %v536_v18, 0  ;;  %v608_v21 = vpop.permute.xlu0 %607 }
  0xc1   : > { %v547_v22 = vsel %vm197_vm0, %v539_v19, 0  ;;  %v612_v23 = vsel %vm611_vm7, %v606_v10, %v608_v21  ;;  %v613_v24 = vsel %vm611_vm7, %v608_v21, %v610_v17  ;;  %585 = vmatpush.bf16.msra.mxu1 %v550_v20  ;;  %v756_v37 = vpop.permute.xlu2 %755 }
  0xc2   : > { %912 = vmatmul.msk.bf16.vlgmr.msrb.gmra.mxu2 %vm193_vm1, %v909_v16  ;;  %v618_v25 = vsel %vm197_vm0, %v612_v23, 0  ;;  %v621_v26 = vsel %vm197_vm0, %v613_v24, 0  ;;  %572 = vmatpush.bf16.msra.mxu0 %v547_v22 }
  0xc3   : > { %633 = vmatpush.bf16.msra.mxu2 %v618_v25  ;;  %646 = vmatpush.bf16.msra.mxu3 %v621_v26 }
  0xc8   : > { %910 = vmatmul.msk.bf16.vlgmr.msrb.gmra.mxu0 %vm193_vm1, %v909_v16 }
  0xc9   : > { %659 = vmatpush.bf16.msrb.mxu0 %v624_v27  ;;  %v684_v29 = vpop.permute.xlu1 %683 }
  0xca   : > { %v698_v30 = vsel %vm197_vm0, %v684_v29, 0  ;;  %v682_v31 = vpop.permute.xlu0 %681 }
  0xcb   : > { %v687_v32 = vsel %vm685_vm8, %v682_v31, %v684_v29  ;;  %v686_v33 = vsel %vm685_vm8, %v680_v28, %v682_v31  ;;  %733 = vmatpush.bf16.msrb.mxu3 %v698_v30 }
  0xcc   : > { %v695_v35 = vsel %vm197_vm0, %v687_v32, 0  ;;  %v692_v36 = vsel %vm197_vm0, %v686_v33, 0 }
  0xcd   : > { %919 = vmatmul.msk.bf16.vlgmr.msra.gmra.mxu3 %vm193_vm1, %v917_v34  ;;  %707 = vmatpush.bf16.msrb.mxu1 %v692_v36 }
  0xce   : > { %720 = vmatpush.bf16.msrb.mxu2 %v695_v35 }
  0xd0   : > { %916 = vmatmul.msk.bf16.vlgmr.msra.gmra.mxu1 %vm193_vm1, %v913_v15 }
  0xd2   : > { %918 = vmatmul.msk.bf16.vlgmr.msra.gmra.mxu2 %vm193_vm1, %v917_v34  ;;  %v758_v38 = vpop.permute.xlu0 %757  ;;  %v754_v39 = vpop.permute.xlu1 %753 }
  0xd3   : > { %v772_v40 = vsel %vm197_vm0, %v758_v38, 0  ;;  %v761_v41 = vsel %vm759_vm9, %v756_v37, %v758_v38  ;;  %v760_v42 = vsel %vm759_vm9, %v754_v39, %v756_v37 }
  0xd4   : > { %v769_v43 = vsel %vm197_vm0, %v761_v41, 0  ;;  %807 = vmatpush.bf16.msra.mxu2 %v772_v40  ;;  %v766_v44 = vsel %vm197_vm0, %v760_v42, 0 }
  0xd5   : > { %794 = vmatpush.bf16.msra.mxu1 %v769_v43 }
  0xd8   : > { %915 = vmatmul.msk.bf16.vlgmr.msra.gmra.mxu0 %vm193_vm1, %v913_v15 }
  0xd9   : > { %781 = vmatpush.bf16.msra.mxu0 %v766_v44 }
  0xdd   : > { %924 = vmatmul.msk.bf16.vlgmr.msrb.gmra.mxu3 %vm193_vm1, %v921_v47 }
  0xe0   : > { %922 = vmatmul.msk.bf16.vlgmr.msrb.gmra.mxu1 %vm193_vm1, %v921_v47 }
  0xe2   : > { %923 = vmatmul.msk.bf16.vlgmr.msrb.gmra.mxu2 %vm193_vm1, %v921_v47 }
  0xe8   : > { %920 = vmatmul.msk.bf16.vlgmr.msrb.gmra.mxu0 %vm193_vm1, %v917_v34 }
  0xf0   : > { %927 = vmatmul.msk.bf16.vlgmr.msra.gmra.mxu1 %vm193_vm1, %v925_v48 }
  0xf2   : > { %928 = vmatmul.msk.bf16.vlgmr.msra.gmra.mxu2 %vm193_vm1, %v925_v48 }
  0xf8   : > { %926 = vmatmul.msk.bf16.vlgmr.msra.gmra.mxu0 %vm193_vm1, %v925_v48 }
 0x103   : > { %v820_v50 = vpop.permute.xlu0 %819 }
 0x10d   : > { %v229_v51 = vpop.f32.mrf.mxu1 }
 0x112   : > { %v242_v52 = vpop.f32.mrf.mxu2 }
 0x115   : > { %v216_v53 = vpop.f32.mrf.mxu0  ;;  %v231_v54 = vpop.f32.mrf.mxu1 }
 0x116   : > { %v269_v55 = vadd.f32 %v268_v49, %v216_v53  ;;  %v352_v56 = vpop.f32.mrf.mxu3 }
 0x11a   : > { %v244_v57 = vpop.f32.mrf.mxu2 }
 0x11d   : > { %v218_v58 = vpop.f32.mrf.mxu0  ;;  %v294_v59 = vpop.f32.mrf.mxu1 }
 0x11e   : > { %v295_v60 = vadd.f32 %v294_v59, %v242_v52  ;;  %v354_v61 = vpop.f32.mrf.mxu3 }
 0x125   : > { %v339_v62 = vpop.f32.mrf.mxu2  ;;  %v281_v63 = vpop.f32.mrf.mxu0 }
 0x126   : > { %v369_v0 = vadd.f32 %v339_v62, %v269_v55  ;;  %v282_v1 = vadd.f32 %v281_v63, %v229_v51  ;;  %v296_v2 = vpop.f32.mrf.mxu1 }
 0x128   : > { %v370_v3 = vadd.f32 %v352_v56, %v282_v1 }
 0x12d   : > { %v341_v4 = vpop.f32.mrf.mxu2  ;;  %v283_v5 = vpop.f32.mrf.mxu0 }
 0x12e   : > { %v413_v6 = vpop.f32.mrf.mxu1  ;;  %v439_v7 = vpop.f32.mrf.mxu3 }
 0x12f   : > { %v443_v40 = vadd.f32 %v413_v6, %v369_v0 }
 0x135   : > { %v426_v8 = vpop.f32.mrf.mxu2  ;;  %v365_v9 = vpop.f32.mrf.mxu0 }
 0x136   : > { %v415_v10 = vpop.f32.mrf.mxu1  ;;  %v441_v11 = vpop.f32.mrf.mxu3  ;;  %v444_v32 = vadd.f32 %v426_v8, %v370_v3  ;;  %v371_v36 = vadd.f32 %v365_v9, %v295_v60 }
 0x138   : > { %v445_v41 = vadd.f32 %v439_v7, %v371_v36 }
 0x13d   : > { %v428_v12 = vpop.f32.mrf.mxu2  ;;  %v367_v13 = vpop.f32.mrf.mxu0 }
 0x13e   : > { %v500_v14 = vpop.f32.mrf.mxu1 }
 0x13f   : > { %v518_v33 = vadd.f32 %v500_v14, %v444_v32 }
 0x140   : > { %v561_v15 = vpop.f32.mrf.mxu3 }
 0x145   : > { %v513_v16 = vpop.f32.mrf.mxu2  ;;  %v487_v17 = vpop.f32.mrf.mxu0 }
 0x146   : > { %v502_v18 = vpop.f32.mrf.mxu1  ;;  %v519_v43 = vadd.f32 %v513_v16, %v445_v41  ;;  %v517_v44 = vadd.f32 %v487_v17, %v443_v40 }
 0x148   : > { %v563_v19 = vpop.f32.mrf.mxu3  ;;  %v591_v52 = vadd.f32 %v561_v15, %v517_v44 }
 0x14d   : > { %v515_v20 = vpop.f32.mrf.mxu2  ;;  %v489_v21 = vpop.f32.mrf.mxu0 }
 0x14e   : > { %v587_v22 = vpop.f32.mrf.mxu1 }
 0x14f   : > { %v593_v48 = vadd.f32 %v587_v22, %v519_v43 }
 0x150   : > { %v648_v23 = vpop.f32.mrf.mxu3 }
 0x155   : > { %v635_v24 = vpop.f32.mrf.mxu2  ;;  %v574_v25 = vpop.f32.mrf.mxu0 }
 0x156   : > { %v589_v26 = vpop.f32.mrf.mxu1  ;;  %v592_v38 = vadd.f32 %v574_v25, %v518_v33  ;;  %v665_v55 = vadd.f32 %v635_v24, %v591_v52 }
 0x158   : > { %v650_v27 = vpop.f32.mrf.mxu3  ;;  %v666_v42 = vadd.f32 %v648_v23, %v592_v38 }
 0x15d   : > { %v637_v28 = vpop.f32.mrf.mxu2  ;;  %v576_v29 = vpop.f32.mrf.mxu0 }
 0x15e   : > { %v709_v30 = vpop.f32.mrf.mxu1 }
 0x15f   : > { %v739_v57 = vadd.f32 %v709_v30, %v665_v55 }
 0x160   : > { %v735_v31 = vpop.f32.mrf.mxu3 }
 0x165   : > { %v722_v34 = vpop.f32.mrf.mxu2  ;;  %v661_v35 = vpop.f32.mrf.mxu0 }
 0x166   : > { %v711_v37 = vpop.f32.mrf.mxu1  ;;  %v740_v45 = vadd.f32 %v722_v34, %v666_v42  ;;  %v667_v53 = vadd.f32 %v661_v35, %v593_v48 }
 0x168   : > { %v737_v39 = vpop.f32.mrf.mxu3  ;;  %v741_v58 = vadd.f32 %v735_v31, %v667_v53 }
 0x16d   : > { %v724_v46 = vpop.f32.mrf.mxu2  ;;  %v663_v47 = vpop.f32.mrf.mxu0 }
 0x16e   : > { %v796_v49 = vpop.f32.mrf.mxu1 }
 0x16f   : > { %v814_v51 = vadd.f32 %v796_v49, %v740_v45 }
 0x171   : > { %v823_v54 = vadd.f32 %v820_v50, %v814_v51 }
 0x173   : > { %v826_v56 = vmax.f32 %v823_v54, 0.0 }
 0x175   : > { %829 = vst [vmem:[%s170_s24 + $0x8] sm:$0xff] %v826_v56  ;;  %v809_v59 = vpop.f32.mrf.mxu2  ;;  %v783_v60 = vpop.f32.mrf.mxu0 }
 0x176   : > { %v815_v61 = vadd.f32 %v809_v59, %v741_v58  ;;  %v813_v62 = vadd.f32 %v783_v60, %v739_v57  ;;  %v798_v63 = vpop.f32.mrf.mxu1 }
 0x178   : > { %v824_v0 = vadd.f32 %v820_v50, %v815_v61  ;;  %v822_v1 = vadd.f32 %v820_v50, %v813_v62 }
 0x17a   : > { %v827_v2 = vmax.f32 %v824_v0, 0.0  ;;  %v825_v3 = vmax.f32 %v822_v1, 0.0 }
 0x17c   : > { %831 = vst.msk [vmem:[%s170_s24 + $0x10] sm:$0xff] %vm830_vm10, %v827_v2 }
 0x17d   : > { %828 = vst [vmem:[%s170_s24] sm:$0xff] %v825_v3  ;;  %v785_v4 = vpop.f32.mrf.mxu0  ;;  %v811_v5 = vpop.f32.mrf.mxu2 }
 0x17e PF: > { %s13_s12 = sadd.s32 1, %s957_s12  }
 0x17f   : > { %p10_p4 = scmp.ge.s32.totalorder %s13_s12, 4  }
 0x181   :  { %12 = sbr.rel (!%p10_p4) target bundleno = 1 (0x1), region = 70 }

</bundles_post_ra>
